<compile_context>
chip_gen: v7x
topology: tpu7x:2x2x1
jax: 0.10.0
libtpu: 0.0.40
codegen_flags: <defaults>
</compile_context>

<pallas_src>
import functools
import math

import jax
import jax.numpy as jnp
from jax.experimental import pallas as pl
from jax.experimental.pallas import tpu as pltpu


def _round_up(x, m):
    return (x + m - 1) // m * m


def _linear_softmax_kernel(x_ref, w_ref, b_ref, o_ref, acc_ref, *, n_valid):
    """Computes softmax(x @ W + b) for one (tm, Npad) output tile.

    Grid axis 0 tiles the batch (parallel); grid axis 1 tiles the K reduction
    (arbitrary). acc_ref is an f32 VMEM accumulator resident across K steps.
    """
    k = pl.program_id(1)

    @pl.when(k == 0)
    def _():
        acc_ref[...] = jnp.zeros_like(acc_ref)

    # Pure MXU matmul-accumulate in the steady state (bias/softmax are NOT
    # done per-iteration).
    acc_ref[...] += jnp.dot(
        x_ref[...], w_ref[...], preferred_element_type=jnp.float32
    )

    @pl.when(k == pl.num_programs(1) - 1)
    def _():
        # Finalize: bias once, mask padded label columns, numerically stable
        # softmax over the label axis, lane-dense store.
        logits = acc_ref[...] + b_ref[...].astype(jnp.float32)
        col = jax.lax.broadcasted_iota(jnp.int32, logits.shape, 1)
        neg = jnp.float32(jnp.finfo(jnp.float32).min)
        logits = jnp.where(col < n_valid, logits, neg)
        m = jnp.max(logits, axis=-1, keepdims=True)
        e = jnp.exp(logits - m)
        s = jnp.sum(e, axis=-1, keepdims=True)
        o_ref[...] = (e / s).astype(o_ref.dtype)


def classifier_header_forward(x, weight, bias, *, tm_max=256, tk_max=512):
    """Forward of Classifier_header.

    x:      (B, input_dim)
    weight: (label_num, input_dim)   -- PyTorch nn.Linear weight layout
    bias:   (label_num,)
    returns (B, label_num) softmax probabilities (softmax over dim=1).
    """
    B, D = x.shape
    L, Dw = weight.shape
    assert D == Dw, "input_dim mismatch"

    # --- pad to TPU-friendly tile sizes ------------------------------------
    Mpad = _round_up(max(B, 8), 8)
    tm = min(tm_max, Mpad)
    Mpad = _round_up(Mpad, tm)

    Kpad = _round_up(max(D, 128), 128)
    tk = min(tk_max, Kpad)
    Kpad = _round_up(Kpad, tk)

    Npad = _round_up(max(L, 128), 128)
    # TODO(synk): for very large label_num the full padded label axis kept
    # resident per M tile would need an extra N-tiling pass (two-stage softmax);
    # fine for classifier-head sized outputs.

    xp = x if (B, D) == (Mpad, Kpad) else jnp.pad(x, ((0, Mpad - B), (0, Kpad - D)))
    w2d = jnp.pad(weight.T, ((0, Kpad - D), (0, Npad - L)))       # (Kpad, Npad)
    b2d = jnp.pad(bias, (0, Npad - L)).reshape(1, Npad)            # (1, Npad)

    grid = (Mpad // tm, Kpad // tk)
    kernel = functools.partial(_linear_softmax_kernel, n_valid=L)

    itemsize = jnp.dtype(x.dtype).itemsize
    cost = pl.CostEstimate(
        flops=2 * Mpad * Kpad * Npad,
        transcendentals=Mpad * Npad,
        bytes_accessed=(Mpad * Kpad + Kpad * Npad + Npad + Mpad * Npad) * itemsize,
    )

    out = pl.pallas_call(
        kernel,
        out_shape=jax.ShapeDtypeStruct((Mpad, Npad), x.dtype),
        grid_spec=pltpu.PrefetchScalarGridSpec(
            num_scalar_prefetch=0,
            grid=grid,
            in_specs=[
                pl.BlockSpec((tm, tk), lambda i, k: (i, k)),     # activations
                pl.BlockSpec((tk, Npad), lambda i, k: (k, 0)),   # weight (K-tiled)
                pl.BlockSpec((1, Npad), lambda i, k: (0, 0)),    # bias (resident)
            ],
            out_specs=pl.BlockSpec((tm, Npad), lambda i, k: (i, 0)),
            scratch_shapes=[pltpu.VMEM((tm, Npad), jnp.float32)],
        ),
        compiler_params=pltpu.CompilerParams(
            dimension_semantics=("parallel", "arbitrary"),
        ),
        cost_estimate=cost,
    )(xp, w2d.astype(x.dtype), b2d.astype(x.dtype))

    return out[:B, :L]


if __name__ == "__main__":
    # Deterministic synthetic parameters / inputs (no checkpoint).
    key = jax.random.PRNGKey(0)
    k_x, k_w, k_b = jax.random.split(key, 3)

    B = 2
    input_dim = 32
    label_num = 16

    # PyTorch nn.Linear default init: U(-bound, bound), bound = 1/sqrt(in_features)
    bound = 1.0 / math.sqrt(input_dim)
    weight = jax.random.uniform(
        k_w, (label_num, input_dim), jnp.float32, -bound, bound
    )
    bias = jax.random.uniform(k_b, (label_num,), jnp.float32, -bound, bound)
    x = jax.random.normal(k_x, (B, input_dim), jnp.float32)

    out = classifier_header_forward(x, weight, bias)
    out = jax.block_until_ready(out)

    # Reference: softmax(Linear(x), dim=1), same semantics as the PyTorch module.
    ref = jax.nn.softmax(x @ weight.T + bias[None, :], axis=1)

    assert out.shape == ref.shape, (out.shape, ref.shape)
    assert jnp.allclose(out, ref, atol=1e-5, rtol=1e-5), "mismatch vs reference"
    assert jnp.allclose(jnp.sum(out, axis=1), 1.0, atol=1e-5), "rows must sum to 1"

    print("KERNEL_OK")
</pallas_src>

<mosaic_0001>
module attributes {stable_mosaic.version = 11 : i64} {
  func.func @_linear_softmax_kernel(%arg0: i32, %arg1: i32, %arg2: memref<8x128xf32, #tpu.memory_space<vmem>>, %arg3: memref<128x128xf32, #tpu.memory_space<vmem>>, %arg4: memref<1x128xf32, #tpu.memory_space<vmem>>, %arg5: memref<8x128xf32, #tpu.memory_space<vmem>>, %arg6: memref<8x128xf32, #tpu.memory_space<vmem>>) attributes {dimension_semantics = [#tpu.dimension_semantics<parallel>, #tpu.dimension_semantics<arbitrary>], iteration_bounds = array<i64: 1, 1>, scalar_prefetch = 0 : i64, scratch_operands = 1 : i64, tpu.core_type = #tpu.core_type<tc>, window_params = [{transform_indices = @transform_0, window_bounds = array<i64: 8, 128>}, {transform_indices = @transform_1, window_bounds = array<i64: 128, 128>}, {pipeline_mode = #tpu.pipeline_mode<synchronous>, transform_indices = @transform_2, window_bounds = array<i64: 1, 128>}, {transform_indices = @transform_3, window_bounds = array<i64: 8, 128>}]} {
    %c0_i32 = arith.constant 0 : i32
    %0 = arith.cmpi eq, %arg1, %c0_i32 : i32
    %1 = arith.extui %0 : i1 to i32
    %c0_i32_0 = arith.constant 0 : i32
    %2 = arith.cmpi ne, %1, %c0_i32_0 : i32
    scf.if %2 {
      %cst_10 = arith.constant 0.000000e+00 : f32
      %12 = vector.broadcast %cst_10 : f32 to vector<8x128xf32>
      %c0_11 = arith.constant 0 : index
      %c0_12 = arith.constant 0 : index
      %13 = vector.load %arg6[%c0_11, %c0_12] : memref<8x128xf32, #tpu.memory_space<vmem>>, vector<8x128xf32>
      tpu.vector_store %arg6[%c0_11, %c0_12], %12 {strides = array<i32>} : memref<8x128xf32, #tpu.memory_space<vmem>>, vector<8x128xf32>,
    } else {
    }
    %c0 = arith.constant 0 : index
    %c0_1 = arith.constant 0 : index
    %3 = vector.load %arg6[%c0, %c0_1] : memref<8x128xf32, #tpu.memory_space<vmem>>, vector<8x128xf32>
    %c0_2 = arith.constant 0 : index
    %c0_3 = arith.constant 0 : index
    %4 = vector.load %arg2[%c0_2, %c0_3] : memref<8x128xf32, #tpu.memory_space<vmem>>, vector<8x128xf32>
    %c0_4 = arith.constant 0 : index
    %c0_5 = arith.constant 0 : index
    %5 = vector.load %arg3[%c0_4, %c0_5] : memref<128x128xf32, #tpu.memory_space<vmem>>, vector<128x128xf32>
    %cst = arith.constant dense<0.000000e+00> : vector<8x128xf32>
    %6 = tpu.matmul %4, %5, %cst {dimension_numbers = #tpu.dot_dimension_numbers<[1], [0], [0], [1], [0, 0, 1, 1], [], []>} : vector<8x128xf32>, vector<128x128xf32>, vector<8x128xf32> -> vector<8x128xf32>
    %7 = arith.addf %3, %6 : vector<8x128xf32>
    %c0_6 = arith.constant 0 : index
    %c0_7 = arith.constant 0 : index
    %8 = vector.load %arg6[%c0_6, %c0_7] : memref<8x128xf32, #tpu.memory_space<vmem>>, vector<8x128xf32>
    tpu.vector_store %arg6[%c0_6, %c0_7], %7 {strides = array<i32>} : memref<8x128xf32, #tpu.memory_space<vmem>>, vector<8x128xf32>,
    %c0_i32_8 = arith.constant 0 : i32
    %9 = arith.cmpi eq, %arg1, %c0_i32_8 : i32
    %10 = arith.extui %9 : i1 to i32
    %c0_i32_9 = arith.constant 0 : i32
    %11 = arith.cmpi ne, %10, %c0_i32_9 : i32
    scf.if %11 {
      %c0_10 = arith.constant 0 : index
      %c0_11 = arith.constant 0 : index
      %12 = vector.load %arg6[%c0_10, %c0_11] : memref<8x128xf32, #tpu.memory_space<vmem>>, vector<8x128xf32>
      %c0_12 = arith.constant 0 : index
      %c0_13 = arith.constant 0 : index
      %13 = vector.load %arg4[%c0_12, %c0_13] : memref<1x128xf32, #tpu.memory_space<vmem>>, vector<1x128xf32>
      %14 = vector.broadcast %13 : vector<1x128xf32> to vector<8x128xf32>
      %15 = arith.addf %12, %14 : vector<8x128xf32>
      %16 = tpu.iota {dimensions = array<i32: 1>} : vector<8x128xi32>
      %c16_i32 = arith.constant 16 : i32
      %17 = vector.broadcast %c16_i32 : i32 to vector<8x128xi32>
      %18 = arith.cmpi slt, %16, %17 : vector<8x128xi32>
      %cst_14 = arith.constant -3.40282347E+38 : f32
      %19 = vector.broadcast %cst_14 : f32 to vector<8x128xf32>
      %20 = arith.select %18, %15, %19 : vector<8x128xi1>, vector<8x128xf32>
      %cst_15 = arith.constant dense<0xFF800000> : vector<8xf32>
      %21 = vector.multi_reduction <maximumf>, %20, %cst_15 [1] : vector<8x128xf32> to vector<8xf32>
      %22 = vector.shape_cast %21 : vector<8xf32> to vector<8x1xf32>
      %23 = vector.broadcast %22 : vector<8x1xf32> to vector<8x128xf32>
      %24 = arith.subf %20, %23 : vector<8x128xf32>
      %25 = math.exp %24 : vector<8x128xf32>
      %cst_16 = arith.constant dense<0.000000e+00> : vector<8xf32>
      %26 = vector.multi_reduction <add>, %25, %cst_16 [1] : vector<8x128xf32> to vector<8xf32>
      %27 = vector.shape_cast %26 : vector<8xf32> to vector<8x1xf32>
      %28 = vector.broadcast %27 : vector<8x1xf32> to vector<8x128xf32>
      %29 = arith.divf %25, %28 : vector<8x128xf32>
      %c0_17 = arith.constant 0 : index
      %c0_18 = arith.constant 0 : index
      %30 = vector.load %arg5[%c0_17, %c0_18] : memref<8x128xf32, #tpu.memory_space<vmem>>, vector<8x128xf32>
      tpu.vector_store %arg5[%c0_17, %c0_18], %29 {strides = array<i32>} : memref<8x128xf32, #tpu.memory_space<vmem>>, vector<8x128xf32>,
    } else {
    }
    return
  }
  func.func @transform_0(%arg0: i32, %arg1: i32) -> (i32, i32) {
    %c0_i32 = arith.constant 0 : i32
    return %arg0, %arg1 : i32, i32
  }
  func.func @transform_1(%arg0: i32, %arg1: i32) -> (i32, i32) {
    %c0_i32 = arith.constant 0 : i32
    %c0_i32_0 = arith.constant 0 : i32
    return %arg1, %c0_i32 : i32, i32
  }
  func.func @transform_2(%arg0: i32, %arg1: i32) -> (i32, i32) {
    %c0_i32 = arith.constant 0 : i32
    %c0_i32_0 = arith.constant 0 : i32
    %c0_i32_1 = arith.constant 0 : i32
    return %c0_i32, %c0_i32_0 : i32, i32
  }
  func.func @transform_3(%arg0: i32, %arg1: i32) -> (i32, i32) {
    %c0_i32 = arith.constant 0 : i32
    %c0_i32_0 = arith.constant 0 : i32
    return %arg0, %c0_i32 : i32, i32
  }
}

</mosaic_0001>

<bundles_post_ra>
// kernel: tpu_custom_call.1
= control target key start
LH: loop header
LB: loop body
LE: loop exit
PB: predicated region body
PF: predicated region fallthrough
CT: control target
= control target key end

     0   :  { %8 = vsyncpa [#allocation4], 0  ;;  %s413_s0 = inlined_call_operand.hbm [shape: f32[8,128], index: 0, kind: input, shape index: {}]   ;;  %s414_s1 = inlined_call_operand.hbm [shape: f32[128,128], index: 1, kind: input, shape index: {}]   ;;  %s415_s2 = inlined_call_operand.vmem [shape: f32[1,128], index: 2, kind: input, shape index: {}]   ;;  %s416_s3 = inlined_call_operand.hbm [shape: f32[8,128], index: 3, kind: output, shape index: {}]  }
   0x1   :  { %9 = vsyncpa [#allocation7], 0 }
   0x2   :  { %10 = vsyncpa [#allocation5], 0  ;;  %s339_s12 = smov [#allocation3]   ;;  %s340_s14 = smov [#allocation6]  }
   0x3   :  { %s17_s13 = sshll.u32 %s339_s12, 4  ;;  %s26_s15 = sshll.u32 %s340_s14, 4  ;;  %s18_s13 = int_to_ptr.vmem [resolvable:$true] %s17_s13  ;;  %s367_s15 = int_to_ptr.vmem [resolvable:$true] %s26_s15 }
   0x4   :  { %s267_s18 = scalar_lea.hbm %s413_s0, 128 }
   0x5   :  { %p268_p0 = scmp.ne.s32.totalorder %s413_s0, %s267_s18  ;;  %p271_p1 = scmp.lt.u32.totalorder %s267_s18, %s413_s0 }
   0x7   :  { %p273_p2 = pnand %p271_p1, %p268_p0 }
   0x9   :  { %276 = shalt.err (!%p273_p2)
}
   0xa   :  { %s277_s23 = scalar_lea.vmem %s18_s13, 128  ;;  %p282_p4 = scmp.lt.s32.totalorder %s18_s13, %s18_s13 }
   0xb   :  { %p278_p3 = scmp.ne.s32.totalorder %s18_s13, %s277_s23  ;;  %p283_p5 = scmp.lt.s32.totalorder %s277_s23, %s277_s23 }
   0xd   :  { %p284_p6 = por %p283_p5, %p282_p4 }
   0xf   :  { %p285_p7 = pnand %p284_p6, %p278_p3 }
  0x11   :  { %288 = shalt.err (!%p285_p7)
}
  0x12   :  { %20 = dma.hbm_to_vmem [thread:$0]  %s413_s0, 128, %s18_s13, [#allocation4]  }
  0x13   :  { %s289_s28 = scalar_lea.hbm %s414_s1, 2048 }
  0x14   :  { %p290_p8 = scmp.ne.s32.totalorder %s414_s1, %s289_s28  ;;  %p293_p9 = scmp.lt.u32.totalorder %s289_s28, %s414_s1 }
  0x16   :  { %p295_p10 = pnand %p293_p9, %p290_p8 }
  0x18   :  { %298 = shalt.err (!%p295_p10)
}
  0x19   :  { %s299_s6 = scalar_lea.vmem %s367_s15, 2048  ;;  %p304_p12 = scmp.lt.s32.totalorder %s367_s15, %s367_s15 }
  0x1a   :  { %p300_p11 = scmp.ne.s32.totalorder %s367_s15, %s299_s6  ;;  %p305_p13 = scmp.lt.s32.totalorder %s299_s6, %s299_s6 }
  0x1c   :  { %p306_p0 = por %p305_p13, %p304_p12 }
  0x1e   :  { %p307_p1 = pnand %p306_p0, %p300_p11 }
  0x20   :  { %310 = shalt.err (!%p307_p1)
}
  0x21   :  { %s341_s0 = smov 128   ;;  %s342_s7 = smov 8  }
  0x22   :  { %32 = dma.hbm_to_vmem [thread:$0]  %s414_s1, 2048, %s367_s15, [#allocation7], %s341_s0, %s341_s0, %s342_s7  }
  0x23   :  { %333 = dma.done.wait [#allocation4], 128  }
  0x24   :  { %334 = vsyncadd [#allocation4], 4294967168 }
  0x25   :  { %335 = dma.done.wait [#allocation7], 2048  }
  0x26   :  { %336 = vsyncadd [#allocation7], 4294965248  ;;  %v343_v0 = vmov 0.0|0.0   ;;  %vm344_vm0 = vmmov 0   ;;  %v345_v1 = vmov 0.0   ;;  %v48_v2 = vld [vmem:[#allocation6] sm:$0xff]  ;;  %v148_v27 = vlaneseq }
  0x27   :  { %231 = vmatprep.subr.bf16.mxu0 %v343_v0  ;;  %228 = vmatprep.mubr.msk.f32.mxu0 %vm344_vm0, %v345_v1  ;;  %v49_v3 = vld [vmem:[#allocation6 + $0x8] sm:$0xff]  ;;  %v50_v4 = vld [vmem:[#allocation6 + $0x10] sm:$0xff]  ;;  %v51_v6 = vld [vmem:[#allocation6 + $0x18] sm:$0xff]  ;;  %s346_s11 = smov [#allocation8]  }
  0x28   :  { %v232_v5 = vpack.c.bf16 %v49_v3, %v48_v2  ;;  %v235_v7 = vpack.c.bf16 %v51_v6, %v50_v4  ;;  %v52_v8 = vld [vmem:[#allocation6 + $0x20] sm:$0xff]  ;;  %v53_v9 = vld [vmem:[#allocation6 + $0x28] sm:$0xff]  ;;  %v54_v11 = vld [vmem:[#allocation6 + $0x30] sm:$0xff]  ;;  %v149_v28 = vand.u32 127, %v148_v27  ;;  %s168_s12 = sshll.u32 %s346_s11, 4  ;;  %s169_s12 = int_to_ptr.vmem [resolvable:$true] %s168_s12 }
  0x29   :  { %v238_v10 = vpack.c.bf16 %v53_v9, %v52_v8  ;;  %v55_v12 = vld [vmem:[#allocation6 + $0x38] sm:$0xff]  ;;  %v56_v14 = vld [vmem:[#allocation6 + $0x40] sm:$0xff]  ;;  %v57_v15 = vld [vmem:[#allocation6 + $0x48] sm:$0xff]  ;;  %p316_p3 = scmp.lt.s32.totalorder %s169_s12, %s169_s12 }
  0x2a   :  { %233 = vmatpush3.bf16.msra.mxu0 %v232_v5  ;;  %v241_v13 = vpack.c.bf16 %v55_v12, %v54_v11  ;;  %v244_v16 = vpack.c.bf16 %v57_v15, %v56_v14  ;;  %v58_v17 = vld [vmem:[#allocation6 + $0x50] sm:$0xff]  ;;  %v59_v18 = vld [vmem:[#allocation6 + $0x58] sm:$0xff]  ;;  %v60_v20 = vld [vmem:[#allocation6 + $0x60] sm:$0xff]  ;;  %vm150_vm1 = vcmp.lt.s32.totalorder %v149_v28, 16 }
  0x2b   :  { %234 = vmatprep.subr.bf16.mxu0 %v343_v0  ;;  %v247_v19 = vpack.c.bf16 %v59_v18, %v58_v17  ;;  %v61_v21 = vld [vmem:[#allocation6 + $0x68] sm:$0xff]  ;;  %v62_v23 = vld [vmem:[#allocation6 + $0x70] sm:$0xff]  ;;  %v63_v24 = vld [vmem:[#allocation6 + $0x78] sm:$0xff] }
  0x2c   :  { %v250_v22 = vpack.c.bf16 %v61_v21, %v60_v20  ;;  %v253_v25 = vpack.c.bf16 %v63_v24, %v62_v23  ;;  %v47_v26 = vld [vmem:[#allocation3] sm:$0xff] }
  0x2d   :  { %v178_v29 = vld [vmem:[%s415_s2] ss:$0 sm:$0xff]  ;;  %s311_s2 = scalar_lea.vmem %s169_s12, 128 }
  0x2e   :  { %236 = vmatpush3.bf16.msra.mxu0 %v235_v7  ;;  %p312_p2 = scmp.ne.s32.totalorder %s169_s12, %s311_s2  ;;  %p317_p4 = scmp.lt.s32.totalorder %s311_s2, %s311_s2 }
  0x2f   :  { %237 = vmatprep.subr.bf16.mxu0 %v343_v0 }
  0x30   :  { %p318_p5 = por %p317_p4, %p316_p3 }
  0x32   :  { %239 = vmatpush3.bf16.msra.mxu0 %v238_v10  ;;  %p319_p6 = pnand %p318_p5, %p312_p2 }
  0x33   :  { %240 = vmatprep.subr.bf16.mxu0 %v343_v0 }
  0x36   :  { %242 = vmatpush3.bf16.msra.mxu0 %v241_v13 }
  0x37   :  { %243 = vmatprep.subr.bf16.mxu0 %v343_v0 }
  0x3a   :  { %245 = vmatpush3.bf16.msra.mxu0 %v244_v16 }
  0x3b   :  { %246 = vmatprep.subr.bf16.mxu0 %v343_v0 }
  0x3e   :  { %248 = vmatpush3.bf16.msra.mxu0 %v247_v19 }
  0x3f   :  { %249 = vmatprep.subr.bf16.mxu0 %v343_v0 }
  0x42   :  { %251 = vmatpush3.bf16.msra.mxu0 %v250_v22 }
  0x43   :  { %252 = vmatprep.subr.bf16.mxu0 %v343_v0 }
  0x46   :  { %254 = vmatpush3.bf16.msra.mxu0 %v253_v25 }
  0x49   :  { %229 = vmatmul.mubr.f32.vlgmr.msra.gmra.mrb[0].mxu0 %v47_v26 }
 0x11c   :  { %v130_v30 = vpop.f32.mrb[0].mxu0 }
 0x11d   :  { %v147_v31 = vadd.f32 %v178_v29, %v130_v30  ;;  %v230_v32 = vpop.f32.mrb[1].mxu0 }
 0x11f   :  { %v151_v33 = vsel %vm150_vm1, %v147_v31, -3.4028235e+38 }
 0x120   :  { %152 = vmax.xlane.f32.xlu0 %v151_v33 }
 0x1ad   :  { %v153_v34 = vpop.xlane.xlu0 %152 }
 0x1ae   :  { %v154_v35 = vsub.f32 %v151_v33, %v153_v34 }
 0x1b0   :  { %v155_v36 = vmul.f32 1.442695, %v154_v35 }
 0x1b2   :  { %263 = vpow2.f32 %v155_v36 }
 0x1bc   :  { %v264_v37 = vpop.eup %263 }
 0x1bd   :  { %157 = vadd.xlane.f32.xlu0 %v264_v37 }
 0x24a   :  { %v158_v38 = vpop.xlane.xlu0 %157 }
 0x24b   :  { %265 = vrcp.f32 %v158_v38 }
 0x255   :  { %v266_v39 = vpop.eup %265 }
 0x256   :  { %v160_v40 = vmul.f32 %v266_v39, %v264_v37 }
 0x258   :  { %161 = vst [vmem:[#allocation8] sm:$0xff] %v160_v40 }
 0x259   :  { %322 = shalt.err (!%p319_p6)
}
 0x25a   :  { %s323_s15 = scalar_lea.hbm %s416_s3, 128 }
 0x25b   :  { %p324_p7 = scmp.ne.s32.totalorder %s416_s3, %s323_s15  ;;  %p327_p8 = scmp.lt.u32.totalorder %s323_s15, %s416_s3 }
 0x25d   :  { %p329_p9 = pnand %p327_p8, %p324_p7 }
 0x25f   :  { %332 = shalt.err (!%p329_p9)
}
 0x260   :  { %171 = dma.vmem_to_hbm [thread:$0]  %s169_s12, 128, %s416_s3, [#allocation5]  }
 0x261   :  { %337 = dma.done.wait [#allocation5], 128  }
 0x262   :  { %338 = vsyncadd [#allocation5], 4294967168 }
 0x263   :  { %175 = vsyncpa [#allocation4], 1 }
 0x264   :  { %176 = vsyncpa [#allocation7], 1 }
 0x265   :  { %177 = vsyncpa [#allocation5], 1 }

</bundles_post_ra>
